<compile_context>
chip_gen: v7x
topology: tpu7x:2x2x1
jax: 0.10.0
libtpu: 0.0.40
codegen_flags: <defaults>
</compile_context>

<pallas_src>
import functools
import math

import jax
import jax.numpy as jnp
from jax.experimental import pallas as pl
from jax.experimental.pallas import tpu as pltpu


def _attn_kernel(x_ref, wqkv_ref, bqkv_ref, wp_ref, bp_ref, out_ref, y_scr,
                 *, n_head):
    # x_ref block: (1, T, C) -> one batch element's (T, C) slab (bf16).
    x = x_ref[0]                      # (T, C)
    T, C = x.shape
    hd = C // n_head

    # Fused QKV projection on the MXU.  Weights are pre-transposed (C, 3C) and
    # the 1/sqrt(hd) scale is already folded into the query columns.
    qkv = jnp.dot(x, wqkv_ref[...],
                  preferred_element_type=jnp.float32) + bqkv_ref[0]  # (T, 3C) f32

    # Causal mask (lower-triangular), matching masked_fill(mask == 0, -1e10).
    row = jax.lax.broadcasted_iota(jnp.int32, (T, T), 0)
    col = jax.lax.broadcasted_iota(jnp.int32, (T, T), 1)
    causal = row >= col
    neg = jnp.float32(-1e10)

    # Per-head attention (static loop; slices are static).
    for h in range(n_head):
        qh = qkv[:, h * hd:(h + 1) * hd].astype(jnp.bfloat16)              # (T, hd)
        kh = qkv[:, C + h * hd:C + (h + 1) * hd].astype(jnp.bfloat16)      # (T, hd)
        vh = qkv[:, 2 * C + h * hd:2 * C + (h + 1) * hd].astype(jnp.bfloat16)

        # q @ k^T without an explicit transpose: contract last dims of both.
        att = jax.lax.dot_general(qh, kh, (((1,), (1,)), ((), ())),
                                  preferred_element_type=jnp.float32)      # (T, T)
        att = jnp.where(causal, att, neg)

        # Numerically-stable softmax over keys.
        att = att - jnp.max(att, axis=-1, keepdims=True)
        att = jnp.exp(att)
        att = att * pl.reciprocal(jnp.sum(att, axis=-1, keepdims=True),
                                  approx=True)

        # Write this head's output directly into the (T, C) scratch slab.
        y_scr[:, h * hd:(h + 1) * hd] = jnp.dot(
            att.astype(jnp.bfloat16), vh, preferred_element_type=jnp.float32)

    # Output projection (weight pre-transposed).
    y = y_scr[...].astype(jnp.bfloat16)
    out = jnp.dot(y, wp_ref[...],
                  preferred_element_type=jnp.float32) + bp_ref[0]
    out_ref[0] = out.astype(out_ref.dtype)


def causal_self_attention(x, params, n_head):
    """x: (B, T, C) float32. params: dict of wq,bq,wk,bk,wv,bv,wp,bp (PyTorch layout)."""
    B, T, C = x.shape
    out_dtype = x.dtype
    scale = 1.0 / math.sqrt(C // n_head)

    # Fuse QKV, fold the attention scale into the query weight/bias, and
    # pre-transpose so the kernel computes plain x @ W (no in-kernel .T).
    w_qkv = jnp.concatenate(
        [params["wq"] * scale, params["wk"], params["wv"]], axis=0).T       # (C, 3C)
    b_qkv = jnp.concatenate(
        [params["bq"] * scale, params["bk"], params["bv"]], axis=1)         # (1, 3C)
    w_p = params["wp"].T                                                    # (C, C)
    b_p = params["bp"]                                                      # (1, C)

    # bf16 MXU operands, f32 accumulation (biases stay f32).
    x_bf = x.astype(jnp.bfloat16)
    w_qkv = w_qkv.astype(jnp.bfloat16)
    w_p = w_p.astype(jnp.bfloat16)
    b_qkv = b_qkv.astype(jnp.float32)
    b_p = b_p.astype(jnp.float32)

    return pl.pallas_call(
        functools.partial(_attn_kernel, n_head=n_head),
        out_shape=jax.ShapeDtypeStruct((B, T, C), out_dtype),
        grid_spec=pltpu.PrefetchScalarGridSpec(
            num_scalar_prefetch=0,
            grid=(B,),
            in_specs=[
                pl.BlockSpec((1, T, C), lambda b: (b, 0, 0)),      # x
                pl.BlockSpec((C, 3 * C), lambda b: (0, 0)),        # fused QKV weight
                pl.BlockSpec((1, 3 * C), lambda b: (0, 0)),        # fused QKV bias
                pl.BlockSpec((C, C), lambda b: (0, 0)),            # proj weight
                pl.BlockSpec((1, C), lambda b: (0, 0)),            # proj bias
            ],
            out_specs=pl.BlockSpec((1, T, C), lambda b: (b, 0, 0)),
            scratch_shapes=[pltpu.VMEM((T, C), jnp.float32)],      # y slab (per-head writes)
        ),
        compiler_params=pltpu.CompilerParams(
            dimension_semantics=("parallel",)),
    )(x_bf, w_qkv, b_qkv, w_p, b_p)


def _reference(x, params, n_head):
    """Pure-JAX f32 reference mirroring the PyTorch forward (eval mode)."""
    B, T, C = x.shape
    hd = C // n_head

    def lin(x, w, b):
        return x @ w.T + b[0]

    q = lin(x, params["wq"], params["bq"]).reshape(B, T, n_head, hd).transpose(0, 2, 1, 3)
    k = lin(x, params["wk"], params["bk"]).reshape(B, T, n_head, hd).transpose(0, 2, 1, 3)
    v = lin(x, params["wv"], params["bv"]).reshape(B, T, n_head, hd).transpose(0, 2, 1, 3)

    att = (q @ k.transpose(0, 1, 3, 2)) * (1.0 / math.sqrt(hd))
    mask = jnp.tril(jnp.ones((T, T)))[None, None]
    att = jnp.where(mask == 0, -1e10, att)
    att = jax.nn.softmax(att, axis=-1)
    y = (att @ v).transpose(0, 2, 1, 3).reshape(B, T, C)
    return lin(y, params["wp"], params["bp"])


if __name__ == "__main__":
    # Small config consistent with the module: B=2, T(block_size)=8, C(n_embd)=32, n_head=4.
    B, T, C, n_head = 2, 8, 32, 4

    key = jax.random.PRNGKey(0)
    ks = jax.random.split(key, 9)
    scale = 0.02
    params = {
        "wq": scale * jax.random.normal(ks[0], (C, C), jnp.float32),
        "bq": scale * jax.random.normal(ks[1], (1, C), jnp.float32),
        "wk": scale * jax.random.normal(ks[2], (C, C), jnp.float32),
        "bk": scale * jax.random.normal(ks[3], (1, C), jnp.float32),
        "wv": scale * jax.random.normal(ks[4], (C, C), jnp.float32),
        "bv": scale * jax.random.normal(ks[5], (1, C), jnp.float32),
        "wp": scale * jax.random.normal(ks[6], (C, C), jnp.float32),
        "bp": scale * jax.random.normal(ks[7], (1, C), jnp.float32),
    }
    x = jax.random.normal(ks[8], (B, T, C), jnp.float32)

    out = causal_self_attention(x, params, n_head)
    out = jax.block_until_ready(out)

    ref = _reference(x, params, n_head)
    assert out.shape == (B, T, C)
    # bf16 MXU inputs + approx reciprocal -> looser tolerance than pure f32.
    assert jnp.allclose(out, ref, atol=1e-2, rtol=1e-2), "mismatch vs reference"

    print("KERNEL_OK")
</pallas_src>

<mosaic_0001>
module attributes {stable_mosaic.version = 11 : i64} {
  func.func @_attn_kernel(%arg0: i32, %arg1: memref<1x8x32xbf16, #tpu.memory_space<vmem>>, %arg2: memref<32x96xbf16, #tpu.memory_space<vmem>>, %arg3: memref<1x96xf32, #tpu.memory_space<vmem>>, %arg4: memref<32x32xbf16, #tpu.memory_space<vmem>>, %arg5: memref<1x32xf32, #tpu.memory_space<vmem>>, %arg6: memref<1x8x32xf32, #tpu.memory_space<vmem>>, %arg7: memref<8x32xf32, #tpu.memory_space<vmem>>) attributes {dimension_semantics = [#tpu.dimension_semantics<parallel>], iteration_bounds = array<i64: 2>, scalar_prefetch = 0 : i64, scratch_operands = 1 : i64, tpu.core_type = #tpu.core_type<tc>, window_params = [{transform_indices = @transform_0, window_bounds = array<i64: 1, 8, 32>}, {pipeline_mode = #tpu.pipeline_mode<synchronous>, transform_indices = @transform_1, window_bounds = array<i64: 32, 96>}, {pipeline_mode = #tpu.pipeline_mode<synchronous>, transform_indices = @transform_2, window_bounds = array<i64: 1, 96>}, {pipeline_mode = #tpu.pipeline_mode<synchronous>, transform_indices = @transform_3, window_bounds = array<i64: 32, 32>}, {pipeline_mode = #tpu.pipeline_mode<synchronous>, transform_indices = @transform_4, window_bounds = array<i64: 1, 32>}, {transform_indices = @transform_5, window_bounds = array<i64: 1, 8, 32>}]} {
    %c0 = arith.constant 0 : index
    %c0_0 = arith.constant 0 : index
    %c0_1 = arith.constant 0 : index
    %0 = vector.load %arg1[%c0, %c0_0, %c0_1] : memref<1x8x32xbf16, #tpu.memory_space<vmem>>, vector<1x8x32xbf16>
    %1 = vector.shape_cast %0 : vector<1x8x32xbf16> to vector<8x32xbf16>
    %c0_2 = arith.constant 0 : index
    %c0_3 = arith.constant 0 : index
    %2 = vector.load %arg2[%c0_2, %c0_3] : memref<32x96xbf16, #tpu.memory_space<vmem>>, vector<32x96xbf16>
    %cst = arith.constant dense<0.000000e+00> : vector<8x96xf32>
    %3 = tpu.matmul %1, %2, %cst {dimension_numbers = #tpu.dot_dimension_numbers<[1], [0], [0], [1], [0, 0, 1, 1], [], []>} : vector<8x32xbf16>, vector<32x96xbf16>, vector<8x96xf32> -> vector<8x96xf32>
    %c0_4 = arith.constant 0 : index
    %c0_5 = arith.constant 0 : index
    %4 = vector.load %arg3[%c0_4, %c0_5] : memref<1x96xf32, #tpu.memory_space<vmem>>, vector<1x96xf32>
    %5 = vector.shape_cast %4 : vector<1x96xf32> to vector<96xf32>
    %6 = vector.shape_cast %5 : vector<96xf32> to vector<1x96xf32>
    %7 = vector.broadcast %6 : vector<1x96xf32> to vector<8x96xf32>
    %8 = arith.addf %3, %7 : vector<8x96xf32>
    %9 = tpu.iota {dimensions = array<i32: 0>} : vector<8x8xi32>
    %10 = tpu.iota {dimensions = array<i32: 1>} : vector<8x8xi32>
    %11 = arith.cmpi sge, %9, %10 : vector<8x8xi32>
    %12 = vector.extract_strided_slice %8 {offsets = [0, 0], sizes = [8, 8], strides = [1, 1]} : vector<8x96xf32> to vector<8x8xf32>
    %13 = arith.truncf %12 : vector<8x8xf32> to vector<8x8xbf16>
    %14 = vector.extract_strided_slice %8 {offsets = [0, 32], sizes = [8, 8], strides = [1, 1]} : vector<8x96xf32> to vector<8x8xf32>
    %15 = arith.truncf %14 : vector<8x8xf32> to vector<8x8xbf16>
    %16 = vector.extract_strided_slice %8 {offsets = [0, 64], sizes = [8, 8], strides = [1, 1]} : vector<8x96xf32> to vector<8x8xf32>
    %17 = arith.truncf %16 : vector<8x8xf32> to vector<8x8xbf16>
    %cst_6 = arith.constant dense<0.000000e+00> : vector<8x8xf32>
    %18 = tpu.matmul %13, %15, %cst_6 {dimension_numbers = #tpu.dot_dimension_numbers<[1], [1], [0], [0], [0, 0, 1, 0], [], []>} : vector<8x8xbf16>, vector<8x8xbf16>, vector<8x8xf32> -> vector<8x8xf32>
    %cst_7 = arith.constant -1.000000e+10 : f32
    %19 = vector.broadcast %cst_7 : f32 to vector<8x8xf32>
    %20 = arith.select %11, %18, %19 : vector<8x8xi1>, vector<8x8xf32>
    %cst_8 = arith.constant dense<0xFF800000> : vector<8xf32>
    %21 = vector.multi_reduction <maximumf>, %20, %cst_8 [1] : vector<8x8xf32> to vector<8xf32>
    %22 = vector.shape_cast %21 : vector<8xf32> to vector<8x1xf32>
    %23 = vector.broadcast %22 : vector<8x1xf32> to vector<8x8xf32>
    %24 = arith.subf %20, %23 : vector<8x8xf32>
    %25 = math.exp %24 : vector<8x8xf32>
    %cst_9 = arith.constant dense<0.000000e+00> : vector<8xf32>
    %26 = vector.multi_reduction <add>, %25, %cst_9 [1] : vector<8x8xf32> to vector<8xf32>
    %27 = vector.shape_cast %26 : vector<8xf32> to vector<8x1xf32>
    %28 = tpu.reciprocal %27 {approx = true} : vector<8x1xf32> -> vector<8x1xf32>
    %29 = vector.broadcast %28 : vector<8x1xf32> to vector<8x8xf32>
    %30 = arith.mulf %25, %29 : vector<8x8xf32>
    %31 = arith.truncf %30 : vector<8x8xf32> to vector<8x8xbf16>
    %cst_10 = arith.constant dense<0.000000e+00> : vector<8x8xf32>
    %32 = tpu.matmul %31, %17, %cst_10 {dimension_numbers = #tpu.dot_dimension_numbers<[1], [0], [0], [1], [0, 0, 1, 1], [], []>} : vector<8x8xbf16>, vector<8x8xbf16>, vector<8x8xf32> -> vector<8x8xf32>
    %c0_11 = arith.constant 0 : index
    %c0_12 = arith.constant 0 : index
    %33 = vector.load %arg7[%c0_11, %c0_12] : memref<8x32xf32, #tpu.memory_space<vmem>>, vector<8x8xf32>
    tpu.vector_store %arg7[%c0_11, %c0_12], %32 {strides = array<i32>} : memref<8x32xf32, #tpu.memory_space<vmem>>, vector<8x8xf32>,
    %34 = vector.extract_strided_slice %8 {offsets = [0, 8], sizes = [8, 8], strides = [1, 1]} : vector<8x96xf32> to vector<8x8xf32>
    %35 = arith.truncf %34 : vector<8x8xf32> to vector<8x8xbf16>
    %36 = vector.extract_strided_slice %8 {offsets = [0, 40], sizes = [8, 8], strides = [1, 1]} : vector<8x96xf32> to vector<8x8xf32>
    %37 = arith.truncf %36 : vector<8x8xf32> to vector<8x8xbf16>
    %38 = vector.extract_strided_slice %8 {offsets = [0, 72], sizes = [8, 8], strides = [1, 1]} : vector<8x96xf32> to vector<8x8xf32>
    %39 = arith.truncf %38 : vector<8x8xf32> to vector<8x8xbf16>
    %cst_13 = arith.constant dense<0.000000e+00> : vector<8x8xf32>
    %40 = tpu.matmul %35, %37, %cst_13 {dimension_numbers = #tpu.dot_dimension_numbers<[1], [1], [0], [0], [0, 0, 1, 0], [], []>} : vector<8x8xbf16>, vector<8x8xbf16>, vector<8x8xf32> -> vector<8x8xf32>
    %cst_14 = arith.constant -1.000000e+10 : f32
    %41 = vector.broadcast %cst_14 : f32 to vector<8x8xf32>
    %42 = arith.select %11, %40, %41 : vector<8x8xi1>, vector<8x8xf32>
    %cst_15 = arith.constant dense<0xFF800000> : vector<8xf32>
    %43 = vector.multi_reduction <maximumf>, %42, %cst_15 [1] : vector<8x8xf32> to vector<8xf32>
    %44 = vector.shape_cast %43 : vector<8xf32> to vector<8x1xf32>
    %45 = vector.broadcast %44 : vector<8x1xf32> to vector<8x8xf32>
    %46 = arith.subf %42, %45 : vector<8x8xf32>
    %47 = math.exp %46 : vector<8x8xf32>
    %cst_16 = arith.constant dense<0.000000e+00> : vector<8xf32>
    %48 = vector.multi_reduction <add>, %47, %cst_16 [1] : vector<8x8xf32> to vector<8xf32>
    %49 = vector.shape_cast %48 : vector<8xf32> to vector<8x1xf32>
    %50 = tpu.reciprocal %49 {approx = true} : vector<8x1xf32> -> vector<8x1xf32>
    %51 = vector.broadcast %50 : vector<8x1xf32> to vector<8x8xf32>
    %52 = arith.mulf %47, %51 : vector<8x8xf32>
    %53 = arith.truncf %52 : vector<8x8xf32> to vector<8x8xbf16>
    %cst_17 = arith.constant dense<0.000000e+00> : vector<8x8xf32>
    %54 = tpu.matmul %53, %39, %cst_17 {dimension_numbers = #tpu.dot_dimension_numbers<[1], [0], [0], [1], [0, 0, 1, 1], [], []>} : vector<8x8xbf16>, vector<8x8xbf16>, vector<8x8xf32> -> vector<8x8xf32>
    %c0_18 = arith.constant 0 : index
    %c8 = arith.constant 8 : index
    %55 = vector.load %arg7[%c0_18, %c8] : memref<8x32xf32, #tpu.memory_space<vmem>>, vector<8x8xf32>
    tpu.vector_store %arg7[%c0_18, %c8], %54 {strides = array<i32>} : memref<8x32xf32, #tpu.memory_space<vmem>>, vector<8x8xf32>,
    %56 = vector.extract_strided_slice %8 {offsets = [0, 16], sizes = [8, 8], strides = [1, 1]} : vector<8x96xf32> to vector<8x8xf32>
    %57 = arith.truncf %56 : vector<8x8xf32> to vector<8x8xbf16>
    %58 = vector.extract_strided_slice %8 {offsets = [0, 48], sizes = [8, 8], strides = [1, 1]} : vector<8x96xf32> to vector<8x8xf32>
    %59 = arith.truncf %58 : vector<8x8xf32> to vector<8x8xbf16>
    %60 = vector.extract_strided_slice %8 {offsets = [0, 80], sizes = [8, 8], strides = [1, 1]} : vector<8x96xf32> to vector<8x8xf32>
    %61 = arith.truncf %60 : vector<8x8xf32> to vector<8x8xbf16>
    %cst_19 = arith.constant dense<0.000000e+00> : vector<8x8xf32>
    %62 = tpu.matmul %57, %59, %cst_19 {dimension_numbers = #tpu.dot_dimension_numbers<[1], [1], [0], [0], [0, 0, 1, 0], [], []>} : vector<8x8xbf16>, vector<8x8xbf16>, vector<8x8xf32> -> vector<8x8xf32>
    %cst_20 = arith.constant -1.000000e+10 : f32
    %63 = vector.broadcast %cst_20 : f32 to vector<8x8xf32>
    %64 = arith.select %11, %62, %63 : vector<8x8xi1>, vector<8x8xf32>
    %cst_21 = arith.constant dense<0xFF800000> : vector<8xf32>
    %65 = vector.multi_reduction <maximumf>, %64, %cst_21 [1] : vector<8x8xf32> to vector<8xf32>
    %66 = vector.shape_cast %65 : vector<8xf32> to vector<8x1xf32>
    %67 = vector.broadcast %66 : vector<8x1xf32> to vector<8x8xf32>
    %68 = arith.subf %64, %67 : vector<8x8xf32>
    %69 = math.exp %68 : vector<8x8xf32>
    %cst_22 = arith.constant dense<0.000000e+00> : vector<8xf32>
    %70 = vector.multi_reduction <add>, %69, %cst_22 [1] : vector<8x8xf32> to vector<8xf32>
    %71 = vector.shape_cast %70 : vector<8xf32> to vector<8x1xf32>
    %72 = tpu.reciprocal %71 {approx = true} : vector<8x1xf32> -> vector<8x1xf32>
    %73 = vector.broadcast %72 : vector<8x1xf32> to vector<8x8xf32>
    %74 = arith.mulf %69, %73 : vector<8x8xf32>
    %75 = arith.truncf %74 : vector<8x8xf32> to vector<8x8xbf16>
    %cst_23 = arith.constant dense<0.000000e+00> : vector<8x8xf32>
    %76 = tpu.matmul %75, %61, %cst_23 {dimension_numbers = #tpu.dot_dimension_numbers<[1], [0], [0], [1], [0, 0, 1, 1], [], []>} : vector<8x8xbf16>, vector<8x8xbf16>, vector<8x8xf32> -> vector<8x8xf32>
    %c0_24 = arith.constant 0 : index
    %c16 = arith.constant 16 : index
    %77 = vector.load %arg7[%c0_24, %c16] : memref<8x32xf32, #tpu.memory_space<vmem>>, vector<8x8xf32>
    tpu.vector_store %arg7[%c0_24, %c16], %76 {strides = array<i32>} : memref<8x32xf32, #tpu.memory_space<vmem>>, vector<8x8xf32>,
    %78 = vector.extract_strided_slice %8 {offsets = [0, 24], sizes = [8, 8], strides = [1, 1]} : vector<8x96xf32> to vector<8x8xf32>
    %79 = arith.truncf %78 : vector<8x8xf32> to vector<8x8xbf16>
    %80 = vector.extract_strided_slice %8 {offsets = [0, 56], sizes = [8, 8], strides = [1, 1]} : vector<8x96xf32> to vector<8x8xf32>
    %81 = arith.truncf %80 : vector<8x8xf32> to vector<8x8xbf16>
    %82 = vector.extract_strided_slice %8 {offsets = [0, 88], sizes = [8, 8], strides = [1, 1]} : vector<8x96xf32> to vector<8x8xf32>
    %83 = arith.truncf %82 : vector<8x8xf32> to vector<8x8xbf16>
    %cst_25 = arith.constant dense<0.000000e+00> : vector<8x8xf32>
    %84 = tpu.matmul %79, %81, %cst_25 {dimension_numbers = #tpu.dot_dimension_numbers<[1], [1], [0], [0], [0, 0, 1, 0], [], []>} : vector<8x8xbf16>, vector<8x8xbf16>, vector<8x8xf32> -> vector<8x8xf32>
    %cst_26 = arith.constant -1.000000e+10 : f32
    %85 = vector.broadcast %cst_26 : f32 to vector<8x8xf32>
    %86 = arith.select %11, %84, %85 : vector<8x8xi1>, vector<8x8xf32>
    %cst_27 = arith.constant dense<0xFF800000> : vector<8xf32>
    %87 = vector.multi_reduction <maximumf>, %86, %cst_27 [1] : vector<8x8xf32> to vector<8xf32>
    %88 = vector.shape_cast %87 : vector<8xf32> to vector<8x1xf32>
    %89 = vector.broadcast %88 : vector<8x1xf32> to vector<8x8xf32>
    %90 = arith.subf %86, %89 : vector<8x8xf32>
    %91 = math.exp %90 : vector<8x8xf32>
    %cst_28 = arith.constant dense<0.000000e+00> : vector<8xf32>
    %92 = vector.multi_reduction <add>, %91, %cst_28 [1] : vector<8x8xf32> to vector<8xf32>
    %93 = vector.shape_cast %92 : vector<8xf32> to vector<8x1xf32>
    %94 = tpu.reciprocal %93 {approx = true} : vector<8x1xf32> -> vector<8x1xf32>
    %95 = vector.broadcast %94 : vector<8x1xf32> to vector<8x8xf32>
    %96 = arith.mulf %91, %95 : vector<8x8xf32>
    %97 = arith.truncf %96 : vector<8x8xf32> to vector<8x8xbf16>
    %cst_29 = arith.constant dense<0.000000e+00> : vector<8x8xf32>
    %98 = tpu.matmul %97, %83, %cst_29 {dimension_numbers = #tpu.dot_dimension_numbers<[1], [0], [0], [1], [0, 0, 1, 1], [], []>} : vector<8x8xbf16>, vector<8x8xbf16>, vector<8x8xf32> -> vector<8x8xf32>
    %c0_30 = arith.constant 0 : index
    %c24 = arith.constant 24 : index
    %99 = vector.load %arg7[%c0_30, %c24] : memref<8x32xf32, #tpu.memory_space<vmem>>, vector<8x8xf32>
    tpu.vector_store %arg7[%c0_30, %c24], %98 {strides = array<i32>} : memref<8x32xf32, #tpu.memory_space<vmem>>, vector<8x8xf32>,
    %c0_31 = arith.constant 0 : index
    %c0_32 = arith.constant 0 : index
    %100 = vector.load %arg7[%c0_31, %c0_32] : memref<8x32xf32, #tpu.memory_space<vmem>>, vector<8x32xf32>
    %101 = arith.truncf %100 : vector<8x32xf32> to vector<8x32xbf16>
    %c0_33 = arith.constant 0 : index
    %c0_34 = arith.constant 0 : index
    %102 = vector.load %arg4[%c0_33, %c0_34] : memref<32x32xbf16, #tpu.memory_space<vmem>>, vector<32x32xbf16>
    %cst_35 = arith.constant dense<0.000000e+00> : vector<8x32xf32>
    %103 = tpu.matmul %101, %102, %cst_35 {dimension_numbers = #tpu.dot_dimension_numbers<[1], [0], [0], [1], [0, 0, 1, 1], [], []>} : vector<8x32xbf16>, vector<32x32xbf16>, vector<8x32xf32> -> vector<8x32xf32>
    %c0_36 = arith.constant 0 : index
    %c0_37 = arith.constant 0 : index
    %104 = vector.load %arg5[%c0_36, %c0_37] : memref<1x32xf32, #tpu.memory_space<vmem>>, vector<1x32xf32>
    %105 = vector.shape_cast %104 : vector<1x32xf32> to vector<32xf32>
    %106 = vector.shape_cast %105 : vector<32xf32> to vector<1x32xf32>
    %107 = vector.broadcast %106 : vector<1x32xf32> to vector<8x32xf32>
    %108 = arith.addf %103, %107 : vector<8x32xf32>
    %c0_38 = arith.constant 0 : index
    %c0_39 = arith.constant 0 : index
    %c0_40 = arith.constant 0 : index
    %109 = vector.load %arg6[%c0_38, %c0_39, %c0_40] : memref<1x8x32xf32, #tpu.memory_space<vmem>>, vector<1x8x32xf32>
    %110 = vector.shape_cast %109 : vector<1x8x32xf32> to vector<8x32xf32>
    %111 = vector.shape_cast %108 : vector<8x32xf32> to vector<1x8x32xf32>
    tpu.vector_store %arg6[%c0_38, %c0_39, %c0_40], %111 {strides = array<i32>} : memref<1x8x32xf32, #tpu.memory_space<vmem>>, vector<1x8x32xf32>,
    return
  }
  func.func @transform_0(%arg0: i32) -> (i32, i32, i32) {
    %c0_i32 = arith.constant 0 : i32
    %c0_i32_0 = arith.constant 0 : i32
    %c0_i32_1 = arith.constant 0 : i32
    return %arg0, %c0_i32, %c0_i32_0 : i32, i32, i32
  }
  func.func @transform_1(%arg0: i32) -> (i32, i32) {
    %c0_i32 = arith.constant 0 : i32
    %c0_i32_0 = arith.constant 0 : i32
    %c0_i32_1 = arith.constant 0 : i32
    return %c0_i32, %c0_i32_0 : i32, i32
  }
  func.func @transform_2(%arg0: i32) -> (i32, i32) {
    %c0_i32 = arith.constant 0 : i32
    %c0_i32_0 = arith.constant 0 : i32
    %c0_i32_1 = arith.constant 0 : i32
    return %c0_i32, %c0_i32_0 : i32, i32
  }
  func.func @transform_3(%arg0: i32) -> (i32, i32) {
    %c0_i32 = arith.constant 0 : i32
    %c0_i32_0 = arith.constant 0 : i32
    %c0_i32_1 = arith.constant 0 : i32
    return %c0_i32, %c0_i32_0 : i32, i32
  }
  func.func @transform_4(%arg0: i32) -> (i32, i32) {
    %c0_i32 = arith.constant 0 : i32
    %c0_i32_0 = arith.constant 0 : i32
    %c0_i32_1 = arith.constant 0 : i32
    return %c0_i32, %c0_i32_0 : i32, i32
  }
  func.func @transform_5(%arg0: i32) -> (i32, i32, i32) {
    %c0_i32 = arith.constant 0 : i32
    %c0_i32_0 = arith.constant 0 : i32
    %c0_i32_1 = arith.constant 0 : i32
    return %arg0, %c0_i32, %c0_i32_0 : i32, i32, i32
  }
}

</mosaic_0001>

<bundles_post_ra>
// kernel: tpu_custom_call.1
= control target key start
LH: loop header
LB: loop body
LE: loop exit
PB: predicated region body
PF: predicated region fallthrough
CT: control target
= control target key end

     0   :  { %10 = vsyncpa [#allocation4], 0  ;;  %s1727_s0 = inlined_call_operand.hbm [shape: bf16[2,8,32], index: 0, kind: input, shape index: {}]   ;;  %s1728_s1 = inlined_call_operand.hbm [shape: bf16[32,96], index: 1, kind: input, shape index: {}]   ;;  %s1729_s2 = inlined_call_operand.vmem [shape: f32[1,96], index: 2, kind: input, shape index: {}]   ;;  %s1730_s3 = inlined_call_operand.hbm [shape: bf16[32,32], index: 3, kind: input, shape index: {}]   ;;  %s1731_s4 = inlined_call_operand.vmem [shape: f32[1,32], index: 4, kind: input, shape index: {}]   ;;  %s1732_s5 = inlined_call_operand.hbm [shape: f32[2,8,32], index: 5, kind: output, shape index: {}]  }
   0x1   :  { %12 = vsyncpa [#allocation4 + $0x1], 0 }
   0x2   :  { %13 = vsyncpa [#allocation7], 0 }
   0x3   :  { %14 = vsyncpa [#allocation5], 0 }
   0x4   :  { %16 = vsyncpa [#allocation5 + $0x1], 0  ;;  %s1413_s18 = smov 0   ;;  %s1415_s19 = smov 0  }
   0x5   :  { %s1417_s20 = smov 0   ;;  %s1419_s21 = smov 0  }
   0x6 LB: > { %s1434_s22 = sadd.s32 4294967295, %s1359_s21   ;;  %s980_s23 = sadd.s32 4294967294, %s1359_s21   ;;  %s1359_s21 = sphi %s1419_s21, %s1752_s21   ;;  %s1355_s20 = sphi %s1417_s20, %s1751_s20   ;;  %s1351_s19 = sphi %s1415_s19, %s1750_s19   ;;  %s1347_s18 = sphi %s1413_s18, %s1749_s18  }
   0x7   : > { %p42_p0 = scmp.ne.s32.totalorder %s1351_s19, %s1347_s18  ;;  %p1733_p1 = scmp.eq.s32.totalorder %s1434_s22, 0 }
   0x8   : > { %p156_p3 = scmp.eq.s32.totalorder %s980_s23, 1  ;;  %p981_p5 = scmp.ge.s32.totalorder %s1359_s21, 1 }
   0x9   : > { %p1443_p4 = por %p1733_p1, %p42_p0  ;;  %p163_p7 = scmp.lt.s32.totalorder %s1359_s21, 3 }
   0xa   : > { %p1448_p6 = por %p156_p3, %p42_p0  ;;  %s1361_s27 = smov [#allocation6]  }
   0xb   : > { %s1736_s24 = scalar_select %p1443_p4, 1, 0 }
   0xc   : > { %s1737_s25 = scalar_select %p1448_p6, 1, 0 }
   0xd   : > { %p1453_p8 = pnand %p981_p5, %p163_p7  ;;  %s175_s28 = sshll.u32 %s1361_s27, 4  ;;  %s1457_s28 = int_to_ptr.vmem [resolvable:$true] %s175_s28 }
   0xe   : > { %s1362_s30 = smov [#allocation8]   ;;  %s1203_s9 = scalar_lea.hbm %s1728_s1, 256 }
   0xf   : > { %p1110_p9 = pneg %p1453_p8  ;;  %s191_s6 = sshll.u32 %s1362_s30, 4  ;;  %s1468_s6 = int_to_ptr.vmem [resolvable:$true] %s191_s6 }
  0x10   : > { %p1204_p12 = scmp.ne.s32.totalorder %s1728_s1, %s1203_s9  ;;  %p1210_p5 = scmp.lt.u32.totalorder %s1203_s9, %s1728_s1 }
  0x11   : > { %p1464_p11 = pnand %p1110_p9, %p1733_p1 }
  0x13   : > { %p1205_p13 = pneg %p1464_p11 }
  0x15   : > { %p1206_p0 = pnand %p1205_p13, %p1204_p12 }
  0x17   : > { %p1207_p3 = pneg %p1206_p0 }
  0x19   : > { %p1212_p7 = pnand %p1210_p5, %p1207_p3 }
  0x1b   : > { %1215 = shalt.err (!%p1212_p7)
}
  0x1c   : > { %s1216_s14 = scalar_lea.vmem %s1457_s28, 256  ;;  %p1224_p2 = scmp.lt.s32.totalorder %s1457_s28, %s1457_s28 }
  0x1d   : > { %p1217_p9 = scmp.ne.s32.totalorder %s1457_s28, %s1216_s14  ;;  %p1225_p12 = scmp.lt.s32.totalorder %s1216_s14, %s1216_s14 }
  0x1f   : > { %p1219_p10 = pnand %p1217_p9, %p1205_p13  ;;  %p1226_p0 = por %p1225_p12, %p1224_p2 }
  0x21   : > { %p1220_p1 = pneg %p1219_p10 }
  0x23   : > { %p1227_p6 = pnand %p1226_p0, %p1220_p1 }
  0x25   : > { %1230 = shalt.err (!%p1227_p6)
}
  0x26   : > { %s1363_s15 = smov 64   ;;  %s1364_s16 = smov 4  }
  0x27   : > { %1113 = dma.hbm_to_vmem [thread:$0]  (!%p1464_p11), %s1728_s1, 256, %s1457_s28, [#allocation7], %s1363_s15, %s1363_s15, %s1364_s16  }
  0x28   : > { %s1231_s7 = scalar_lea.hbm %s1730_s3, 256 }
  0x29   : > { %p1232_p2 = scmp.ne.s32.totalorder %s1730_s3, %s1231_s7  ;;  %p1238_p10 = scmp.lt.u32.totalorder %s1231_s7, %s1730_s3 }
  0x2b   : > { %p1234_p1 = pnand %p1232_p2, %p1205_p13 }
  0x2d   : > { %p1235_p6 = pneg %p1234_p1 }
  0x2f   : > { %p1240_p3 = pnand %p1238_p10, %p1235_p6 }
  0x31   : > { %1243 = shalt.err (!%p1240_p3)
}
  0x32   : > { %s1244_s28 = scalar_lea.vmem %s1468_s6, 256  ;;  %p1252_p12 = scmp.lt.s32.totalorder %s1468_s6, %s1468_s6 }
  0x33   : > { %p1245_p5 = scmp.ne.s32.totalorder %s1468_s6, %s1244_s28  ;;  %p1253_p0 = scmp.lt.s32.totalorder %s1244_s28, %s1244_s28 }
  0x35   : > { %p1247_p7 = pnand %p1245_p5, %p1205_p13  ;;  %p1254_p2 = por %p1253_p0, %p1252_p12 }
  0x37   : > { %p1248_p9 = pneg %p1247_p7 }
  0x39   : > { %p1255_p1 = pnand %p1254_p2, %p1248_p9 }
  0x3b   : > { %1258 = shalt.err (!%p1255_p1)
}
  0x3c   : > { %1116 = dma.hbm_to_vmem [thread:$0]  (!%p1464_p11), %s1730_s3, 256, %s1468_s6, [#allocation7], %s1363_s15, %s1363_s15, %s1364_s16  }
  0x3d   : > { %s1523_s14 = sadd.s32 1, %s1359_s21   ;;  %s29_s29 = sadd.s32 1, %s1355_s20 }
  0x3e   : > { %s26_s17 = ssub.s32 %s1359_s21, %s1523_s14  ;;  %p36_p13 = scmp.ne.s32.totalorder %s1355_s20, %s1351_s19 }
  0x3f   : > { %p27_p6 = scmp.eq.s32.totalorder %s26_s17, 0  ;;  %p37_p10 = scmp.eq.s32.totalorder %s1359_s21, 0 }
  0x40   : > { %p1740_p3 = scmp.eq.s32.totalorder %s1434_s22, 1  ;;  %p1127_p7 = scmp.lt.s32.totalorder %s1359_s21, 2 }
  0x41   : > { %s1539_s27 = scalar_select %p27_p6, %s1355_s20, %s29_s29  }
  0x42   : > { %p1533_p5 = por %p1740_p3, %p36_p13  ;;  %p38_p9 = por %p37_p10, %p36_p13 }
  0x43   : > { %s208_s30 = sand.u32 1, %s1355_s20   ;;  %s986_s6 = sshll.u32 %s1359_s21, 6 }
  0x44   : > { %s1741_s23 = scalar_select %p1533_p5, 1, 0 }
  0x45   : > { %s985_s7 = sshll.u32 %s208_s30, 2  ;;  %s1546_s8 = scalar_lea.hbm %s1727_s0, %s986_s6 }
  0x46   : > { %s212_s9 = scalar_lea.vmem [#allocation3], %s985_s7  ;;  %p1550_p11 = pnand %p1127_p7, %p38_p9 }
  0x47   : > { %s219_s10 = sshll.u32 %s212_s9, 4  ;;  %s209_s28 = scalar_lea.sflag [#allocation4], %s208_s30  ;;  %s1548_s10 = int_to_ptr.vmem [resolvable:$true] %s219_s10 }
  0x48   : > { %s1259_s12 = scalar_lea.hbm %s1546_s8, 64  ;;  %p1261_p0 = pneg %p1550_p11 }
  0x49   : > { %p1260_p12 = scmp.ne.s32.totalorder %s1546_s8, %s1259_s12  ;;  %s1264_s17 = scalar_lea.hbm %s1727_s0, 128 }
  0x4a   : > { %p1265_p13 = scmp.lt.u32.totalorder %s1546_s8, %s1727_s0  ;;  %p1266_p6 = scmp.lt.u32.totalorder %s1264_s17, %s1259_s12 }
  0x4b   : > { %p1262_p2 = pnand %p1261_p0, %p1260_p12  ;;  %p1268_p3 = scmp.lt.u32.totalorder %s1259_s12, %s1546_s8 }
  0x4c   : > { %p1267_p10 = por %p1266_p6, %p1265_p13 }
  0x4d   : > { %p1263_p1 = pneg %p1262_p2 }
  0x4e   : > { %p1269_p7 = por %p1268_p3, %p1267_p10 }
  0x50   : > { %p1270_p9 = pnand %p1269_p7, %p1263_p1 }
  0x52   : > { %1273 = shalt.err (!%p1270_p9)
}
  0x53   : > { %s1274_s30 = scalar_lea.vmem %s1548_s10, 64  ;;  %s1365_s15 = smov [#allocation3]  }
  0x54   : > { %p1275_p12 = scmp.ne.s32.totalorder %s1548_s10, %s1274_s30  ;;  %s1279_s16 = sshll.u32 %s1365_s15, 4  ;;  %s1280_s16 = int_to_ptr.vmem [resolvable:$false] %s1279_s16 }
  0x55   : > { %s1281_s9 = scalar_lea.vmem %s1280_s16, 128  ;;  %p1282_p4 = scmp.lt.s32.totalorder %s1548_s10, %s1280_s16 }
  0x56   : > { %p1277_p2 = pnand %p1275_p12, %p1261_p0  ;;  %p1283_p13 = scmp.lt.s32.totalorder %s1281_s9, %s1274_s30 }
  0x58   : > { %p1278_p5 = pneg %p1277_p2  ;;  %p1284_p6 = por %p1283_p13, %p1282_p4 }
  0x5a   : > { %p1285_p10 = pnand %p1284_p6, %p1278_p5 }
  0x5c   : > { %1288 = shalt.err (!%p1285_p10)
}
  0x5d   : > { %1120 = dma.hbm_to_vmem [thread:$0]  (!%p1550_p11), %s1546_s8, 64, %s1548_s10, %s209_s28  }
  0x5e   : > { %228 = sbr.rel (%p1453_p8) target bundleno = 1610 (0x64a), region = 40  ;;  %s1582_s12 = sand.u32 (!%p1453_p8), 1, %s1351_s19  }
  0x5f   : > { %s988_s13 = sshll.u32 (!%p1453_p8), %s1582_s12, 2  ;;  %s231_s29 = scalar_lea.sflag (!%p1453_p8), [#allocation4], %s1582_s12 }
  0x60   : > { %s234_s17 = scalar_lea.vmem (!%p1453_p8), [#allocation3], %s988_s13  ;;  %p1743_p4 = scmp.ne.s32.totalorder (!%p1453_p8), %s1736_s24, 0 }
  0x65   : > { %1334 = dma.done.wait (%p1743_p4), %s231_s29, 64  }
  0x66   : > { %1336 = vsyncadd (%p1743_p4), %s231_s29, 4294967232  ;;  %p1744_p5 = scmp.eq.s32.totalorder %s1434_s22, 0 }
  0x68   : > { %1338 = dma.done.wait (%p1744_p5), [#allocation7], 512   ;;  %p1745_p11 = pmov %p1744_p5 }
  0x69   : > { %v1366_v0 = vmov 0.0   ;;  %vm1367_vm0 = vmmov 0   ;;  %v1183_v1 = vld [vmem:[#allocation6] sm:$0xff]   ;;  %v1184_v2 = vld [vmem:[#allocation6 + $0x8] sm:$0xff]   ;;  %v270_v3 = vld [vmem:[%s234_s17] sm:$0xf]  ;;  %v338_v22 = vlaneseq }
  0x6a   : > { %1340 = vsyncadd (%p1745_p11), [#allocation7], 4294966784  ;;  %1034 = vmatprep.subr.bf16.mxu0 %v1366_v0  ;;  %1038 = vmatprep.mubr.msk.bf16.mxu0 %vm1367_vm0, %v1366_v0  ;;  %vm294_vm1 = vcmask 261120   ;;  %v992_v4 = vld [vmem:[%s1729_s2] ss:$0 sm:$0xff]  ;;  %s1368_s8 = smov 120  }
  0x6b   : > { %1042 = vmatprep.subr.bf16.mxu1 %v1366_v0  ;;  %1044 = vmatprep.mubr.msk.bf16.mxu1 %vm1367_vm0, %v1366_v0  ;;  %s1369_s10 = smov 96   ;;  %s1370_s11 = smov 80   ;;  %vm347_vm2 = vcmask 64512   ;;  %v339_v23 = vshrl.u32 %v338_v22, 7  ;;  %v341_v24 = vand.u32 127, %v338_v22  ;;  %vm412_vm4 = vcmask 1043456  }
  0x6c   : > { %1035 = vmatpush3.bf16.msra.mxu0 %v1183_v1  ;;  %s1371_s28 = smov 88   ;;  %s1372_s7 = smov 72   ;;  %vm572_vm5 = vcmask 130112   ;;  %vm689_vm6 = vcmask 195712   ;;  %vm806_vm7 = vcmask 261312  }
  0x6d   : > { %1036 = vmatprep.subr.bf16.mxu0 %v1366_v0  ;;  %s1373_s6 = smov 112   ;;  %s1374_s30 = smov 104   ;;  %vm342_vm3 = vcmp.ge.s32.totalorder %v339_v23, %v341_v24 }
  0x6e   : > { %s1375_s15 = smov 56   ;;  %s1376_s16 = smov 64  }
  0x6f   : > { %s1377_s9 = smov 40   ;;  %s1378_s13 = smov 48  }
  0x70   : > { %1037 = vmatpush3.bf16.msra.mxu0 %v1184_v2  ;;  %s1379_s29 = smov 8   ;;  %s1380_s17 = smov 16  }
  0x71   : > { %1048 = vmatprep.subr.bf16.mxu0 %v1366_v0  ;;  %s1381_s24 = smov 24   ;;  %s991_s26 = sshll.u32 %s1582_s12, 3 }
  0x72   : > { %p1746_p0 = scmp.ne.s32.totalorder %s1741_s23, 0 }
  0x73   : > { %1039 = vmatmul.mubr.msk.bf16.vlgmr.msra.gmra.mrb[0].mxu0 %vm294_vm1, %v270_v3 }
  0x74   : > { %1050 = vmatprep.mubr.msk.bf16.mxu0 %vm1367_vm0, %v1366_v0 }
 0x146   : > { %v332_v5 = vpop.f32.mrb[0].mxu0 }
 0x147   : > { %v333_v6 = vadd.f32 %v992_v4, %v332_v5  ;;  %v1040_v7 = vpop.f32.mrb[1].mxu0 }
 0x148   : > { %v335_v8 = vpop.f32.mrb[2].mxu0 }
 0x149   : > { %v1608_v9 = vpack.c.bf16 %v333_v6, %v333_v6  ;;  %v1041_v10 = vpop.f32.mrb[3].mxu0 }
 0x14b   : > { %457 = vrot.lane.b32.xlu1 %v1608_v9, %s1368_s8  ;;  %345 = vrot.lane.b32.xlu0 %v1608_v9, %s1369_s10 }
 0x14f   : > { %576 = vrot.lane.b32.xlu1 %v1608_v9, %s1370_s11  ;;  %459 = vrot.lane.b32.xlu0 %v1608_v9, %s1371_s28  ;;  %s1009_s11 = sshll.u32 %s1434_s22, 7  ;;  %s268_s28 = scalar_lea.vmem [#allocation9], %s991_s26 }
 0x150   : > { %s878_s22 = scalar_lea.sflag [#allocation5], %s1582_s12 }
 0x153   : > { %693 = vrot.lane.b32.xlu1 %v1608_v9, %s1372_s7  ;;  %574 = vrot.lane.b32.xlu0 %v1608_v9, %s1373_s6  ;;  %s891_s7 = sshll.u32 %s268_s28, 4  ;;  %s1684_s7 = int_to_ptr.vmem [resolvable:$true] %s891_s7 }
 0x157   : > { %691 = vrot.lane.b32.xlu0 %v1608_v9, %s1374_s30 }
 0x1bd   : > { %v346_v11 = vpop.permute.xlu0 %345  ;;  %v458_v14 = vpop.permute.xlu1 %457 }
 0x1be   : > { %v352_v12 = vsel %vm347_vm2, %v346_v11, 0 }
 0x1bf   : > { %1043 = vmatpush3.bf16.xpose.msra.mxu1 %v352_v12 }
 0x1c0   : > { %1054 = vmatprep.subr.bf16.mxu1 %v1366_v0 }
 0x1c1   : > { %v460_v13 = vpop.permute.xlu0 %459  ;;  %v577_v16 = vpop.permute.xlu1 %576 }
 0x1c2   : > { %v465_v15 = vsel %vm347_vm2, %v460_v13, 0  ;;  %v582_v17 = vsel %vm347_vm2, %v577_v16, 0 }
 0x1c5   : > { %v694_v18 = vpop.permute.xlu1 %693  ;;  %v575_v19 = vpop.permute.xlu0 %574 }
 0x1c6   : > { %1045 = vmatmul.mubr.msk.bf16.vlgmr.msra.gmra.mrb[0].mxu1 %vm347_vm2, %v1608_v9  ;;  %v699_v20 = vsel %vm347_vm2, %v694_v18, 0 }
 0x1c7   : > { %1055 = vmatpush3.bf16.xpose.msra.mxu1 %v465_v15  ;;  %1056 = vmatprep.mubr.msk.bf16.mxu1 %vm1367_vm0, %v1366_v0 }
 0x1c8   : > { %1066 = vmatprep.subr.bf16.mxu1 %v1366_v0 }
 0x1c9   : > { %v692_v21 = vpop.permute.xlu0 %691 }
 0x1ce   : > { %1057 = vmatmul.mubr.msk.bf16.vlgmr.msra.gmra.mrb[4].mxu1 %vm347_vm2, %v458_v14 }
 0x1cf   : > { %1067 = vmatpush3.bf16.xpose.msra.mxu1 %v582_v17  ;;  %1068 = vmatprep.mubr.msk.bf16.mxu1 %vm1367_vm0, %v1366_v0 }
 0x1d0   : > { %1078 = vmatprep.subr.bf16.mxu1 %v1366_v0 }
 0x1d6   : > { %1069 = vmatmul.mubr.msk.bf16.vlgmr.msra.gmra.mrb[8].mxu1 %vm347_vm2, %v575_v19 }
 0x1d7   : > { %1079 = vmatpush3.bf16.xpose.msra.mxu1 %v699_v20  ;;  %1080 = vmatprep.mubr.msk.bf16.mxu1 %vm1367_vm0, %v1366_v0 }
 0x1d8   : > { %1090 = vmatprep.subr.bf16.mxu1 %v1366_v0 }
 0x1de   : > { %1081 = vmatmul.mubr.msk.bf16.vlgmr.msra.gmra.mrb[12].mxu1 %vm347_vm2, %v692_v21 }
 0x1df   : > { %1094 = vmatprep.mubr.msk.bf16.mxu1 %vm1367_vm0, %v1366_v0 }
 0x299   : > { %v388_v25 = vpop.f32.mrb[0].mxu1 }
 0x29a   : > { %v394_v26 = vsel %vm342_vm3, %v388_v25, -1e+10  ;;  %v1046_v27 = vpop.f32.mrb[1].mxu1 }
 0x29b   : > { %v391_v28 = vpop.f32.mrb[2].mxu1  ;;  %v395_v29 = vsel %vm347_vm2, %v394_v26, -inf }
 0x29c   : > { %396 = vmax.xlane.f32.xlu1 %v395_v29  ;;  %v1047_v30 = vpop.f32.mrb[3].mxu1 }
 0x2a1   : > { %v501_v31 = vpop.f32.mrb[4].mxu1 }
 0x2a2   : > { %v507_v32 = vsel %vm342_vm3, %v501_v31, -1e+10  ;;  %v1058_v33 = vpop.f32.mrb[5].mxu1 }
 0x2a3   : > { %v504_v34 = vpop.f32.mrb[6].mxu1  ;;  %v508_v35 = vsel %vm347_vm2, %v507_v32, -inf }
 0x2a4   : > { %509 = vmax.xlane.f32.xlu0 %v508_v35  ;;  %v1059_v36 = vpop.f32.mrb[7].mxu1 }
 0x2a9   : > { %v618_v37 = vpop.f32.mrb[8].mxu1 }
 0x2aa   : > { %v624_v38 = vsel %vm342_vm3, %v618_v37, -1e+10  ;;  %v1070_v39 = vpop.f32.mrb[9].mxu1 }
 0x2ab   : > { %v621_v40 = vpop.f32.mrb[10].mxu1  ;;  %v625_v41 = vsel %vm347_vm2, %v624_v38, -inf  ;;  %v1186_v39 = vld [vmem:[#allocation8 + $0x8] sm:$0xff]  }
 0x2ac   : > { %626 = vmax.xlane.f32.xlu0 %v625_v41  ;;  %v1071_v42 = vpop.f32.mrb[11].mxu1 }
 0x2b1   : > { %v735_v43 = vpop.f32.mrb[12].mxu1 }
 0x2b2   : > { %v741_v44 = vsel %vm342_vm3, %v735_v43, -1e+10  ;;  %v1082_v45 = vpop.f32.mrb[13].mxu1 }
 0x2b3   : > { %v738_v46 = vpop.f32.mrb[14].mxu1  ;;  %v742_v47 = vsel %vm347_vm2, %v741_v44, -inf }
 0x2b4   : > { %743 = vmax.xlane.f32.xlu1 %v742_v47  ;;  %v1083_v48 = vpop.f32.mrb[15].mxu1 }
 0x329   : > { %v397_v49 = vpop.xlane.xlu1 %396 }
 0x32a   : > { %v398_v50 = vsub.f32 %v394_v26, %v397_v49 }
 0x32c   : > { %v399_v51 = vmul.f32 1.442695, %v398_v50 }
 0x32e   : > { %1187 = vpow2.f32 %v399_v51 }
 0x331   : > { %v510_v52 = vpop.xlane.xlu0 %509 }
 0x332   : > { %v511_v53 = vsub.f32 %v507_v32, %v510_v52  ;;  %v1004_v52 = vld [vmem:[%s1731_s4] ss:$0 sm:$0xff] }
 0x334   : > { %v512_v54 = vmul.f32 1.442695, %v511_v53 }
 0x336   : > { %1189 = vpow2.f32 %v512_v54 }
 0x338   : > { %v1188_v55 = vpop.eup %1187 }
 0x339   : > { %v627_v56 = vpop.xlane.xlu0 %626  ;;  %v401_v57 = vsel %vm347_vm2, %v1188_v55, 0.0 }
 0x33a   : > { %v628_v58 = vsub.f32 %v624_v38, %v627_v56  ;;  %402 = vadd.xlane.f32.xlu0 %v401_v57  ;;  %v1185_v38 = vld [vmem:[#allocation8] sm:$0xff]  }
 0x33b   : > { %1091 = vmatpush3.bf16.msra.mxu1 %v1185_v38 }
 0x33c   : > { %v629_v59 = vmul.f32 1.442695, %v628_v58  ;;  %1092 = vmatprep.subr.bf16.mxu1 %v1366_v0 }
 0x33e   : > { %1191 = vpow2.f32 %v629_v59 }
 0x33f   : > { %1093 = vmatpush3.bf16.msra.mxu1 %v1186_v39 }
 0x340   : > { %v1190_v60 = vpop.eup %1189 }
 0x341   : > { %v514_v61 = vsel %vm347_vm2, %v1190_v60, 0.0  ;;  %v744_v1 = vpop.xlane.xlu1 %743 }
 0x342   : > { %515 = vadd.xlane.f32.xlu1 %v514_v61  ;;  %v745_v2 = vsub.f32 %v741_v44, %v744_v1 }
 0x344   : > { %v746_v3 = vmul.f32 1.442695, %v745_v2 }
 0x346   : > { %1193 = vpow2.f32 %v746_v3 }
 0x348   : > { %v1192_v62 = vpop.eup %1191 }
 0x349   : > { %v631_v63 = vsel %vm347_vm2, %v1192_v62, 0.0 }
 0x34a   : > { %632 = vadd.xlane.f32.xlu0 %v631_v63 }
 0x350   : > { %v1194_v4 = vpop.eup %1193 }
 0x351   : > { %v748_v5 = vsel %vm347_vm2, %v1194_v4, 0.0 }
 0x353   : > { %520 = vrot.lane.b32.xlu1 %v1608_v9, %s1375_s15  ;;  %s1682_s15 = scalar_lea.hbm %s1732_s5, %s1009_s11 }
 0x360   : > { %407 = vrot.lane.b32.xlu0 %v1608_v9, %s1376_s16  ;;  %s1289_s16 = scalar_lea.vmem %s1684_s7, 128 }
 0x361   : > { %p1290_p8 = scmp.ne.s32.totalorder %s1684_s7, %s1289_s16 }
 0x363   : > { %p1291_p1 = pnand %p1290_p8, %p1746_p0 }
 0x364   : > { %754 = vrot.lane.b32.xlu0 %v1608_v9, %s1377_s9  ;;  %s1382_s9 = smov [#allocation9]  }
 0x365   : > { %p1292_p3 = pneg %p1291_p1 }
 0x377   : > { %749 = vadd.xlane.f32.xlu1 %v748_v5 }
 0x388   : > { %637 = vrot.lane.b32.xlu1 %v1608_v9, %s1378_s13  ;;  %s1293_s13 = sshll.u32 %s1382_s9, 4  ;;  %s1294_s13 = int_to_ptr.vmem [resolvable:$false] %s1293_s13 }
 0x389   : > { %p1296_p7 = scmp.lt.s32.totalorder %s1684_s7, %s1294_s13 }
 0x3c7   : > { %v403_v6 = vpop.xlane.xlu0 %402 }
 0x3c8   : > { %1195 = vrcp.f32 %v403_v6 }
 0x3cf   : > { %v516_v7 = vpop.xlane.xlu1 %515 }
 0x3d0   : > { %1197 = vrcp.f32 %v516_v7 }
 0x3d2   : > { %v1196_v8 = vpop.eup %1195 }
 0x3d3   : > { %v405_v11 = vmul.f32 %v1196_v8, %v1188_v55  ;;  %v521_v14 = vpop.permute.xlu1 %520 }
 0x3d4   : > { %v526_v17 = vsel %vm412_vm4, %v521_v14, 0 }
 0x3d5   : > { %v406_v15 = vpack.c.bf16 %v405_v11, %v405_v11 }
 0x3d7   : > { %v633_v10 = vpop.xlane.xlu0 %632 }
 0x3d8   : > { %1199 = vrcp.f32 %v633_v10 }
 0x3da   : > { %v1198_v16 = vpop.eup %1197 }
 0x3db   : > { %v408_v12 = vpop.permute.xlu0 %407  ;;  %v518_v9 = vmul.f32 %v1198_v16, %v1190_v60 }
 0x3dc   : > { %v414_v13 = vsel %vm412_vm4, %v408_v12, 0 }
 0x3dd   : > { %1049 = vmatpush3.bf16.msra.mxu0 %v414_v13  ;;  %v519_v18 = vpack.c.bf16 %v518_v9, %v518_v9 }
 0x3de   : > { %1060 = vmatprep.subr.bf16.mxu0 %v1366_v0 }
 0x3df   : > { %v755_v24 = vpop.permute.xlu0 %754 }
 0x3e0   : > { %1051 = vmatmul.mubr.msk.bf16.vlgmr.msra.gmra.mrb[4].mxu0 %vm347_vm2, %v406_v15  ;;  %v760_v26 = vsel %vm412_vm4, %v755_v24, 0 }
 0x3e1   : > { %1061 = vmatpush3.bf16.msra.mxu0 %v526_v17  ;;  %1062 = vmatprep.mubr.msk.bf16.mxu0 %vm1367_vm0, %v1366_v0 }
 0x3e2   : > { %1072 = vmatprep.subr.bf16.mxu0 %v1366_v0  ;;  %v1200_v19 = vpop.eup %1199 }
 0x3e3   : > { %v635_v21 = vmul.f32 %v1200_v19, %v1192_v62 }
 0x3e5   : > { %v636_v25 = vpack.c.bf16 %v635_v21, %v635_v21 }
 0x3e8   : > { %1063 = vmatmul.mubr.msk.bf16.vlgmr.msra.gmra.mrb[8].mxu0 %vm347_vm2, %v519_v18 }
 0x3e9   : > { %1074 = vmatprep.mubr.msk.bf16.mxu0 %vm1367_vm0, %v1366_v0 }
 0x404   : > { %v750_v20 = vpop.xlane.xlu1 %749 }
 0x405   : > { %1201 = vrcp.f32 %v750_v20 }
 0x408   : > { %v638_v22 = vpop.permute.xlu1 %637 }
 0x409   : > { %v643_v23 = vsel %vm412_vm4, %v638_v22, 0 }
 0x40a   : > { %1073 = vmatpush3.bf16.msra.mxu0 %v643_v23 }
 0x40b   : > { %1084 = vmatprep.subr.bf16.mxu0 %v1366_v0 }
 0x40d   : > { %1075 = vmatmul.mubr.msk.bf16.vlgmr.msra.gmra.mrb[12].mxu0 %vm347_vm2, %v636_v25 }
 0x40e   : > { %1085 = vmatpush3.bf16.msra.mxu0 %v760_v26  ;;  %1086 = vmatprep.mubr.msk.bf16.mxu0 %vm1367_vm0, %v1366_v0 }
 0x40f   : > { %v1202_v27 = vpop.eup %1201 }
 0x410   : > { %v752_v28 = vmul.f32 %v1202_v27, %v1194_v4 }
 0x412   : > { %v753_v29 = vpack.c.bf16 %v752_v28, %v752_v28 }
 0x415   : > { %1087 = vmatmul.mubr.msk.bf16.vlgmr.msra.gmra.mrb[16].mxu0 %vm347_vm2, %v753_v29 }
 0x4b3   : > { %v450_v30 = vpop.f32.mrb[4].mxu0 }
 0x4b4   : > { %456 = vst.msk [vmem:[#allocation2] sm:$0xff] %vm347_vm2, %v450_v30  ;;  %v1052_v31 = vpop.f32.mrb[5].mxu0 }
 0x4b5   : > { %v453_v32 = vpop.f32.mrb[6].mxu0 }
 0x4b6   : > { %v1053_v33 = vpop.f32.mrb[7].mxu0 }
 0x4bb   : > { %v562_v34 = vpop.f32.mrb[8].mxu0 }
 0x4bc   : > { %569 = vrot.lane.b32.xlu1 %v562_v34, %s1379_s29  ;;  %v1064_v35 = vpop.f32.mrb[9].mxu0  ;;  %s1295_s29 = scalar_lea.vmem %s1294_s13, 256 }
 0x4bd   : > { %v565_v36 = vpop.f32.mrb[10].mxu0  ;;  %p1297_p9 = scmp.lt.s32.totalorder %s1295_s29, %s1289_s16 }
 0x4be   : > { %v1065_v37 = vpop.f32.mrb[11].mxu0 }
 0x4bf   : > { %p1298_p12 = por %p1297_p9, %p1296_p7 }
 0x4c1   : > { %p1299_p2 = pnand %p1298_p12, %p1292_p3 }
 0x4e0   : > { %v679_v40 = vpop.f32.mrb[12].mxu0 }
 0x4e1   : > { %686 = vrot.lane.b32.xlu0 %v679_v40, %s1380_s17  ;;  %v1076_v41 = vpop.f32.mrb[13].mxu0 }
 0x4e2   : > { %v682_v42 = vpop.f32.mrb[14].mxu0 }
 0x4e3   : > { %v1077_v43 = vpop.f32.mrb[15].mxu0 }
 0x4e8   : > { %v796_v44 = vpop.f32.mrb[16].mxu0 }
 0x4e9   : > { %803 = vrot.lane.b32.xlu1 %v796_v44, %s1381_s24  ;;  %v1088_v45 = vpop.f32.mrb[17].mxu0 }
 0x4ea   : > { %v799_v46 = vpop.f32.mrb[18].mxu0 }
 0x4eb   : > { %v1089_v47 = vpop.f32.mrb[19].mxu0 }
 0x52e   : > { %v570_v48 = vpop.permute.xlu1 %569 }
 0x52f   : > { %573 = vst.msk [vmem:[#allocation2] sm:$0xff] %vm572_vm5, %v570_v48 }
 0x553   : > { %v687_v0 = vpop.permute.xlu0 %686 }
 0x554   : > { %690 = vst.msk [vmem:[#allocation2] sm:$0xff] %vm689_vm6, %v687_v0 }
 0x55b   : > { %v804_v49 = vpop.permute.xlu1 %803 }
 0x55c   : > { %807 = vst.msk [vmem:[#allocation2] sm:$0xff] %vm806_vm7, %v804_v49 }
 0x563   : > { %v808_v50 = vld [vmem:[#allocation2] sm:$0xff] }
 0x564   : > { %v809_v51 = vpack.c.bf16 %v808_v50, %v808_v50 }
 0x566   : > { %1095 = vmatmul.mubr.msk.bf16.vlgmr.msra.gmra.mrb[16].mxu1 %vm294_vm1, %v809_v51 }
 0x639   : > { %v870_v53 = vpop.f32.mrb[16].mxu1 }
 0x63a   : > { %v871_v54 = vadd.f32 %v1004_v52, %v870_v53  ;;  %v1096_v55 = vpop.f32.mrb[17].mxu1 }
 0x63b   : > { %v873_v56 = vpop.f32.mrb[18].mxu1 }
 0x63c   : > { %v1097_v57 = vpop.f32.mrb[19].mxu1  ;;  %876 = vst.msk [vmem:[%s268_s28] sm:$0xff] %vm294_vm1, %v871_v54 }
 0x63d   : > { %1302 = shalt.err (!%p1299_p2)
}
 0x63e   : > { %s1303_s12 = scalar_lea.hbm %s1682_s15, 128  ;;  %s1307_s26 = scalar_lea.hbm %s1732_s5, 256 }
 0x63f   : > { %p1304_p13 = scmp.ne.s32.totalorder %s1682_s15, %s1303_s12  ;;  %p1308_p4 = scmp.lt.u32.totalorder %s1682_s15, %s1732_s5 }
 0x640   : > { %p1309_p5 = scmp.lt.u32.totalorder %s1307_s26, %s1303_s12  ;;  %p1311_p8 = scmp.lt.u32.totalorder %s1303_s12, %s1682_s15 }
 0x641   : > { %p1305_p6 = pnand %p1304_p13, %p1746_p0 }
 0x642   : > { %p1310_p11 = por %p1309_p5, %p1308_p4 }
 0x643   : > { %p1306_p10 = pneg %p1305_p6 }
 0x644   : > { %p1312_p1 = por %p1311_p8, %p1310_p11 }
 0x646   : > { %p1313_p3 = pnand %p1312_p1, %p1306_p10 }
 0x648   : > { %1316 = shalt.err (!%p1313_p3)
}
 0x649   : > { %1108 = dma.vmem_to_hbm [thread:$0]  (%p1746_p0), %s1684_s7, 128, %s1682_s15, %s878_s22  }
 0x64a PF: > { %s903_s11 = sand.u32 1, %s1347_s18   ;;  %p1747_p7 = scmp.ne.s32.totalorder %s1737_s25, 0 }
 0x64b   : > { %p1748_p9 = scmp.ge.s32.totalorder %s1359_s21, 2  ;;  %s904_s28 = scalar_lea.sflag [#allocation5], %s903_s11 }
 0x64d   : > { %p1122_p12 = pnand %p1748_p9, %p1747_p7 }
 0x64f   : > { %1342 = dma.done.wait (!%p1122_p12), %s904_s28, 128  }
 0x650   : > { %1344 = vsyncadd (!%p1122_p12), %s904_s28, 4294967168  ;;  %p19_p2 = scmp.ge.s32.totalorder %s1523_s14, 4   ;;  %s1749_s18 = smov %s1351_s19 }
 0x651   : > { %s1750_s19 = smov %s1355_s20  ;;  %s1751_s20 = smov %s1539_s27 }
 0x652   : > { %s1752_s21 = smov %s1523_s14  ;;  %21 = sbr.rel (!%p19_p2) target bundleno = 6 (0x6), region = 93 }
 0x659   :  { %909 = vsyncpa [#allocation4], 1 }
 0x65a   :  { %911 = vsyncpa [#allocation4 + $0x1], 1 }
 0x65b   :  { %912 = vsyncpa [#allocation7], 1 }
 0x65c   :  { %913 = vsyncpa [#allocation5], 1 }
 0x65d   :  { %915 = vsyncpa [#allocation5 + $0x1], 1 }

</bundles_post_ra>
